<compile_context>
chip_gen: v6e
topology: v6e:2x2x1
jax: 0.10.0
libtpu: 0.0.40
codegen_flags: <defaults>
</compile_context>

<pallas_src>
import jax
import jax.numpy as jnp
from jax.experimental import pallas as pl
from jax.experimental.pallas import tpu as pltpu


def _round_up(x: int, m: int) -> int:
    return (x + m - 1) // m * m


def _patch_embed_matmul_kernel(x_ref, w_ref, b_ref, o_ref):
    # x_ref: (tm, K) patch tile (streamed), w_ref: (K, N_pad) resident weight,
    # b_ref: (1, N_pad) resident bias, o_ref: (tm, N_pad) output tile.
    acc = jnp.dot(x_ref[...], w_ref[...], preferred_element_type=jnp.float32)
    o_ref[...] = (acc + b_ref[...].astype(jnp.float32)).astype(o_ref.dtype)


def patch_embedding_block(x, weight, bias, patch_size, *, tm=None,
                          compute_dtype=None):
    """
    x:      (B, C, H, W)       NCHW
    weight: (hidden, C, p, p)  Conv2d weight layout
    bias:   (hidden,)
    returns (B, n_patches, hidden)
    """
    B, C, H, W = x.shape
    hidden = weight.shape[0]
    p = patch_size
    assert H % p == 0 and W % p == 0, "img_size must be divisible by patch_size"
    gh, gw = H // p, W // p
    n_patches = gh * gw
    patch_dim = C * p * p

    # --- patch extraction (layout only) -------------------------------------
    # (B, C, gh, p, gw, p) -> (B, gh, gw, C, p, p) -> (B*n_patches, C*p*p)
    # allow_input_fusion below lets XLA fuse this into the pallas input DMA
    # instead of materializing an extra HBM copy of the activations.
    # TODO(synk): for guaranteed zero-copy, move this rearrange into the kernel
    # body with a (1, C, p, W) BlockSpec once Mosaic's 4-D transpose path is
    # validated for these small tile shapes.
    patches = x.reshape(B, C, gh, p, gw, p)
    patches = patches.transpose(0, 2, 4, 1, 3, 5)
    patches = patches.reshape(B * n_patches, patch_dim)

    # Conv2d weight (hidden, C, p, p) at stride==kernel == matmul weight
    # flattened over (C, p, p) -> (patch_dim, hidden).
    w2d = weight.reshape(hidden, patch_dim).T
    b2d = bias.reshape(1, hidden)

    if compute_dtype is not None:
        patches = patches.astype(compute_dtype)
        w2d = w2d.astype(compute_dtype)

    M, K, N = B * n_patches, patch_dim, hidden
    out_dtype = x.dtype
    in_b = patches.dtype.itemsize
    w_b = w2d.dtype.itemsize
    out_b = jnp.dtype(out_dtype).itemsize

    # --- lane-dense output: pad hidden to a multiple of 128 (not beyond) ----
    N_pad = _round_up(N, 128)
    if N_pad != N:
        w2d = jnp.pad(w2d, ((0, 0), (0, N_pad - N)))
        b2d = jnp.pad(b2d, ((0, 0), (0, N_pad - N)))

    # --- M tiling: stream patches/out, keep weight/bias VMEM-resident -------
    row_mult = 16 if in_b == 2 else 8      # dense sublane packing for bf16
    if tm is None:
        if M >= 1024:
            tm = 512                       # multiple of 256 -> full MXU passes
        else:
            # small M: split into >= 2 tiles so both v7x TensorCores get work
            tm = max(row_mult, _round_up(pl.cdiv(M, 2), row_mult))
    tm = max(row_mult, _round_up(tm, row_mult))
    tm = min(tm, _round_up(M, row_mult))

    # VMEM budget (v7x: 64 MiB/TC physical).  Count the compiler's default
    # double-buffering of every operand, including the constant-index weight
    # and bias.  Shrink tm if the budget is exceeded.
    # TODO(synk): on v7x, pipeline_mode=pl.Buffered(1) on the weight/bias
    # BlockSpecs would halve their footprint (constant index_map => double
    # buffering them is pure waste); kept default-buffered here for safety.
    def _vmem_needed(t):
        return (2 * t * K * in_b            # streamed patch tiles
                + 2 * t * N_pad * out_b     # streamed output tiles
                + 2 * K * N_pad * w_b       # resident weight (2 bufs default)
                + 2 * N_pad * 4)            # resident bias
    budget = 32 << 20
    while tm > row_mult and _vmem_needed(tm) > budget:
        tm = max(row_mult, _round_up(tm // 2, row_mult))
    vmem_limit = int(min(max(_vmem_needed(tm) * 5 // 4, 16 << 20), 48 << 20))

    grid_m = pl.cdiv(M, tm)                # ragged last tile handled by Pallas

    out2d = pl.pallas_call(
        _patch_embed_matmul_kernel,
        out_shape=jax.ShapeDtypeStruct((M, N_pad), out_dtype),
        grid=(grid_m,),
        in_specs=[
            pl.BlockSpec((tm, K), lambda i: (i, 0)),      # streamed patches
            pl.BlockSpec((K, N_pad), lambda i: (0, 0)),   # resident weight
            pl.BlockSpec((1, N_pad), lambda i: (0, 0)),   # resident bias
        ],
        out_specs=pl.BlockSpec((tm, N_pad), lambda i: (i, 0)),
        compiler_params=pltpu.CompilerParams(
            dimension_semantics=("parallel",),
            vmem_limit_bytes=vmem_limit,
            # let XLA fuse the patch-extraction transpose into the input DMA
            allow_input_fusion=[True, False, False],
        ),
    )(patches, w2d, b2d)

    # Conv output .flatten(2).transpose(-1,-2): sequence order is (gh, gw)
    # major, which is exactly our patch order.  Only slice off the lane pad.
    if N_pad != N:
        out2d = out2d[:, :N]
    return out2d.reshape(B, n_patches, hidden)


def reference(x, weight, bias, patch_size):
    """Pure-JAX reference: strided conv (kernel==stride) == patch matmul."""
    B, C, H, W = x.shape
    hidden = weight.shape[0]
    p = patch_size
    gh, gw = H // p, W // p
    patches = x.reshape(B, C, gh, p, gw, p).transpose(0, 2, 4, 1, 3, 5)
    patches = patches.reshape(B, gh * gw, C * p * p)
    w2d = weight.reshape(hidden, C * p * p).T
    return patches @ w2d + bias[None, None, :]


if __name__ == "__main__":
    keys = jax.random.split(jax.random.PRNGKey(0), 9)

    pe = jax.jit(patch_embedding_block,
                 static_argnames=("patch_size", "tm", "compute_dtype"))

    # --- primary check (module example-like shapes): in_channels=4,
    #     img_size=16, patch_size=8, hidden_size=32 -> n_patches = 4
    B, C, H, W, p, hid = 2, 4, 16, 16, 8, 32
    x = jax.random.normal(keys[0], (B, C, H, W), dtype=jnp.float32)
    w = 0.02 * jax.random.normal(keys[1], (hid, C, p, p), dtype=jnp.float32)
    b = 0.01 * jax.random.normal(keys[2], (hid,), dtype=jnp.float32)
    out = jax.block_until_ready(pe(x, w, b, patch_size=p))
    ref = reference(x, w, b, p)
    assert out.shape == (B, (H // p) * (W // p), hid), out.shape
    assert jnp.allclose(out, ref, atol=1e-4, rtol=1e-4), "mismatch (primary)"

    # --- ragged-tile check: M=128 with tm=48 -> grid of 3 with a masked last
    #     tile (no manual M padding); hidden=96 exercises N padding to 128.
    B2, C2, H2, W2, p2, hid2 = 2, 4, 64, 64, 8, 96
    x2 = jax.random.normal(keys[3], (B2, C2, H2, W2), dtype=jnp.float32)
    w2 = 0.02 * jax.random.normal(keys[4], (hid2, C2, p2, p2), dtype=jnp.float32)
    b2 = 0.01 * jax.random.normal(keys[5], (hid2,), dtype=jnp.float32)
    out2 = jax.block_until_ready(pe(x2, w2, b2, patch_size=p2, tm=48))
    ref2 = reference(x2, w2, b2, p2)
    assert out2.shape == (B2, (H2 // p2) * (W2 // p2), hid2)
    assert jnp.allclose(out2, ref2, atol=1e-4, rtol=1e-4), "mismatch (ragged)"

    # --- bf16-compute path (production default for real ViT shapes): bf16
    #     patches/weight, f32 accumulate, f32 output; looser tolerance.
    B3, C3, H3, W3, p3, hid3 = 2, 4, 32, 32, 8, 32
    x3 = jax.random.normal(keys[6], (B3, C3, H3, W3), dtype=jnp.float32)
    w3 = 0.02 * jax.random.normal(keys[7], (hid3, C3, p3, p3), dtype=jnp.float32)
    b3 = 0.01 * jax.random.normal(keys[8], (hid3,), dtype=jnp.float32)
    out3 = jax.block_until_ready(
        pe(x3, w3, b3, patch_size=p3, compute_dtype=jnp.bfloat16))
    ref3 = reference(x3, w3, b3, p3)
    assert out3.shape == (B3, (H3 // p3) * (W3 // p3), hid3)
    assert jnp.allclose(out3, ref3, atol=3e-2, rtol=3e-2), "mismatch (bf16)"

    # TODO(synk): pos_embed="perceptron" differs only in patch-flatten order
    # ((p1 p2 c) channel-last) and Linear weight layout; same matmul kernel.
    print("KERNEL_OK")
</pallas_src>

<mosaic_0001>
module attributes {stable_mosaic.version = 11 : i64} {
  func.func @_patch_embed_matmul_kernel(%arg0: i32, %arg1: memref<8x256xf32, #tpu.memory_space<vmem>>, %arg2: memref<256x128xf32, #tpu.memory_space<vmem>>, %arg3: memref<1x128xf32, #tpu.memory_space<vmem>>, %arg4: memref<8x128xf32, #tpu.memory_space<vmem>>) attributes {dimension_semantics = [#tpu.dimension_semantics<parallel>], iteration_bounds = array<i64: 1>, scalar_prefetch = 0 : i64, scratch_operands = 0 : i64, tpu.core_type = #tpu.core_type<tc>, window_params = [{transform_indices = @transform_0, window_bounds = array<i64: 8, 256>}, {pipeline_mode = #tpu.pipeline_mode<synchronous>, transform_indices = @transform_1, window_bounds = array<i64: 256, 128>}, {pipeline_mode = #tpu.pipeline_mode<synchronous>, transform_indices = @transform_2, window_bounds = array<i64: 1, 128>}, {transform_indices = @transform_3, window_bounds = array<i64: 8, 128>}]} {
    %c0 = arith.constant 0 : index
    %c0_0 = arith.constant 0 : index
    %0 = vector.load %arg1[%c0, %c0_0] : memref<8x256xf32, #tpu.memory_space<vmem>>, vector<8x256xf32>
    %c0_1 = arith.constant 0 : index
    %c0_2 = arith.constant 0 : index
    %1 = vector.load %arg2[%c0_1, %c0_2] : memref<256x128xf32, #tpu.memory_space<vmem>>, vector<256x128xf32>
    %cst = arith.constant dense<0.000000e+00> : vector<8x128xf32>
    %2 = tpu.matmul %0, %1, %cst {dimension_numbers = #tpu.dot_dimension_numbers<[1], [0], [0], [1], [0, 0, 1, 1], [], []>} : vector<8x256xf32>, vector<256x128xf32>, vector<8x128xf32> -> vector<8x128xf32>
    %c0_3 = arith.constant 0 : index
    %c0_4 = arith.constant 0 : index
    %3 = vector.load %arg3[%c0_3, %c0_4] : memref<1x128xf32, #tpu.memory_space<vmem>>, vector<1x128xf32>
    %4 = vector.broadcast %3 : vector<1x128xf32> to vector<8x128xf32>
    %5 = arith.addf %2, %4 : vector<8x128xf32>
    %c0_5 = arith.constant 0 : index
    %c0_6 = arith.constant 0 : index
    %6 = vector.load %arg4[%c0_5, %c0_6] : memref<8x128xf32, #tpu.memory_space<vmem>>, vector<8x128xf32>
    tpu.vector_store %arg4[%c0_5, %c0_6], %5 {strides = array<i32>} : memref<8x128xf32, #tpu.memory_space<vmem>>, vector<8x128xf32>,
    return
  }
  func.func @transform_0(%arg0: i32) -> (i32, i32) {
    %c0_i32 = arith.constant 0 : i32
    %c0_i32_0 = arith.constant 0 : i32
    return %arg0, %c0_i32 : i32, i32
  }
  func.func @transform_1(%arg0: i32) -> (i32, i32) {
    %c0_i32 = arith.constant 0 : i32
    %c0_i32_0 = arith.constant 0 : i32
    %c0_i32_1 = arith.constant 0 : i32
    return %c0_i32, %c0_i32_0 : i32, i32
  }
  func.func @transform_2(%arg0: i32) -> (i32, i32) {
    %c0_i32 = arith.constant 0 : i32
    %c0_i32_0 = arith.constant 0 : i32
    %c0_i32_1 = arith.constant 0 : i32
    return %c0_i32, %c0_i32_0 : i32, i32
  }
  func.func @transform_3(%arg0: i32) -> (i32, i32) {
    %c0_i32 = arith.constant 0 : i32
    %c0_i32_0 = arith.constant 0 : i32
    return %arg0, %c0_i32 : i32, i32
  }
}

</mosaic_0001>

<bundles_post_ra>
// kernel: patch_embedding_block.1
= control target key start
LH: loop header
LB: loop body
LE: loop exit
PB: predicated region body
PF: predicated region fallthrough
CT: control target
= control target key end

     0   :  { %s329_s0 = inlined_call_operand.vmem [shape: f32[8,256], index: 0, kind: input, shape index: {}]   ;;  %s330_s1 = inlined_call_operand.vmem [shape: f32[256,128], index: 1, kind: input, shape index: {}]   ;;  %s331_s2 = inlined_call_operand.vmem [shape: f32[1,128], index: 2, kind: input, shape index: {}]   ;;  %s332_s3 = inlined_call_operand.hbm [shape: f32[8,128], index: 3, kind: output, shape index: {}]  }
   0x1   :  { %v48_v0 = vld [vmem:[%s330_s1 + $0xf8] sm:$0xff]  ;;  %v47_v2 = vld [vmem:[%s330_s1 + $0xf0] sm:$0xff]  ;;  %v46_v4 = vld [vmem:[%s330_s1 + $0xe8] sm:$0xff] }
   0x2   :  { %v32_v1 = vld [vmem:[%s330_s1 + $0x78] sm:$0xff]  ;;  %142 = vmatprep.subr.mxu0 %v48_v0  ;;  %v31_v3 = vld [vmem:[%s330_s1 + $0x70] sm:$0xff]  ;;  %v30_v5 = vld [vmem:[%s330_s1 + $0x68] sm:$0xff] }
   0x3   :  { %143 = vmatpush3.msra.mxu0 %v32_v1  ;;  %v45_v6 = vld [vmem:[%s330_s1 + $0xe0] sm:$0xff]  ;;  %v44_v8 = vld [vmem:[%s330_s1 + $0xd8] sm:$0xff]  ;;  %v43_v10 = vld [vmem:[%s330_s1 + $0xd0] sm:$0xff] }
   0x4   :  { %144 = vmatprep.subr.mxu0 %v47_v2  ;;  %v29_v7 = vld [vmem:[%s330_s1 + $0x60] sm:$0xff]  ;;  %v28_v9 = vld [vmem:[%s330_s1 + $0x58] sm:$0xff]  ;;  %v27_v11 = vld [vmem:[%s330_s1 + $0x50] sm:$0xff] }
   0x5   :  { %145 = vmatpush3.msra.mxu0 %v31_v3  ;;  %v42_v12 = vld [vmem:[%s330_s1 + $0xc8] sm:$0xff] }
   0x6   :  { %146 = vmatprep.subr.mxu0 %v46_v4  ;;  %v16_v13 = vld [vmem:[%s329_s0 + $0x8] sm:$0xff] }
   0x7   :  { %147 = vmatpush3.msra.mxu0 %v30_v5  ;;  %v26_v14 = vld [vmem:[%s330_s1 + $0x48] sm:$0xff]  ;;  %120 = vmatprep.mubr.f32.mxu0 %v16_v13 }
   0x8   :  { %148 = vmatprep.subr.mxu0 %v45_v6 }
   0x9   :  { %149 = vmatpush3.msra.mxu0 %v29_v7 }
   0xa   :  { %150 = vmatprep.subr.mxu0 %v44_v8 }
   0xb   :  { %151 = vmatpush3.msra.mxu0 %v28_v9 }
   0xc   :  { %152 = vmatprep.subr.mxu0 %v43_v10 }
   0xd   :  { %8 = vsyncpa [#allocation3], 0  ;;  %153 = vmatpush3.msra.mxu0 %v27_v11  ;;  %v41_v15 = vld [vmem:[%s330_s1 + $0xc0] sm:$0xff]  ;;  %v40_v17 = vld [vmem:[%s330_s1 + $0xb8] sm:$0xff]  ;;  %s200_s28 = smov [#allocation2]  }
   0xe   :  { %154 = vmatprep.subr.mxu0 %v42_v12  ;;  %v25_v16 = vld [vmem:[%s330_s1 + $0x40] sm:$0xff]  ;;  %v24_v18 = vld [vmem:[%s330_s1 + $0x38] sm:$0xff]  ;;  %v39_v19 = vld [vmem:[%s330_s1 + $0xb0] sm:$0xff]  ;;  %s133_s29 = sshll.u32 %s200_s28, 4  ;;  %s134_s29 = int_to_ptr.vmem [resolvable:$true] %s133_s29 }
   0xf   :  { %155 = vmatpush3.msra.mxu0 %v26_v14  ;;  %v23_v20 = vld [vmem:[%s330_s1 + $0x30] sm:$0xff]  ;;  %v38_v21 = vld [vmem:[%s330_s1 + $0xa8] sm:$0xff]  ;;  %v37_v23 = vld [vmem:[%s330_s1 + $0xa0] sm:$0xff]  ;;  %p183_p1 = scmp.lt.s32.totalorder %s134_s29, %s134_s29 }
  0x10   :  { %156 = vmatprep.subr.mxu0 %v41_v15  ;;  %v22_v22 = vld [vmem:[%s330_s1 + $0x28] sm:$0xff]  ;;  %v21_v24 = vld [vmem:[%s330_s1 + $0x20] sm:$0xff]  ;;  %v36_v25 = vld [vmem:[%s330_s1 + $0x98] sm:$0xff] }
  0x11   :  { %157 = vmatpush3.msra.mxu0 %v25_v16  ;;  %v20_v26 = vld [vmem:[%s330_s1 + $0x18] sm:$0xff]  ;;  %v35_v27 = vld [vmem:[%s330_s1 + $0x90] sm:$0xff]  ;;  %v34_v29 = vld [vmem:[%s330_s1 + $0x88] sm:$0xff] }
  0x12   :  { %158 = vmatprep.subr.mxu0 %v40_v17  ;;  %v19_v28 = vld [vmem:[%s330_s1 + $0x10] sm:$0xff]  ;;  %v18_v30 = vld [vmem:[%s330_s1 + $0x8] sm:$0xff]  ;;  %v33_v31 = vld [vmem:[%s330_s1 + $0x80] sm:$0xff] }
  0x13   :  { %159 = vmatpush3.msra.mxu0 %v24_v18  ;;  %v17_v32 = vld [vmem:[%s330_s1] sm:$0xff]  ;;  %s178_s1 = scalar_lea.vmem %s134_s29, 128 }
  0x14   :  { %160 = vmatprep.subr.mxu0 %v39_v19  ;;  %v15_v33 = vld [vmem:[%s329_s0] sm:$0xff]  ;;  %p179_p0 = scmp.ne.s32.totalorder %s134_s29, %s178_s1  ;;  %p184_p2 = scmp.lt.s32.totalorder %s178_s1, %s178_s1 }
  0x15   :  { %161 = vmatpush3.msra.mxu0 %v23_v20  ;;  %v141_v36 = vld [vmem:[%s331_s2] ss:$0 sm:$0xff] }
  0x16   :  { %162 = vmatprep.subr.mxu0 %v38_v21  ;;  %p185_p3 = por %p184_p2, %p183_p1 }
  0x17   :  { %163 = vmatpush3.msra.mxu0 %v22_v22 }
  0x18   :  { %164 = vmatprep.subr.mxu0 %v37_v23  ;;  %p186_p4 = pnand %p185_p3, %p179_p0 }
  0x19   :  { %165 = vmatpush3.msra.mxu0 %v21_v24 }
  0x1a   :  { %166 = vmatprep.subr.mxu0 %v36_v25 }
  0x1b   :  { %167 = vmatpush3.msra.mxu0 %v20_v26 }
  0x1c   :  { %168 = vmatprep.subr.mxu0 %v35_v27 }
  0x1d   :  { %169 = vmatpush3.msra.mxu0 %v19_v28 }
  0x1e   :  { %170 = vmatprep.subr.mxu0 %v34_v29 }
  0x1f   :  { %171 = vmatpush3.msra.mxu0 %v18_v30 }
  0x20   :  { %172 = vmatprep.subr.mxu0 %v33_v31 }
  0x21   :  { %173 = vmatpush3.msra.mxu0 %v17_v32 }
  0x22   :  { %121 = vmatmul.mubr.f32.vlgmr.msra.gmra.mxu0 %v15_v33 }
  0xe2   :  { %v174_v34 = vpop.f32.mrf.mxu0 }
  0xe4   :  { %v175_v35 = vpop.f32.mrf.mxu0 }
  0xe5   :  { %v176_v37 = vadd.f32 %v175_v35, %v174_v34 }
  0xe7   :  { %v123_v38 = vadd.f32 %v176_v37, %v141_v36 }
  0xe9   :  { %126 = vst [vmem:[#allocation2] sm:$0xff] %v123_v38 }
  0xea   :  { %189 = shalt.err (!%p186_p4)
}
  0xeb   :  { %136 = dma.vmem_to_hbm [thread:$0]  %s134_s29, 128, %s332_s3, [#allocation3]  }
  0xec   :  { %198 = dma.done.wait [#allocation3], 128  }
  0xed   :  { %199 = vsyncadd [#allocation3], 4294967168 }
  0xee   :  { %140 = vsyncpa [#allocation3], 1 }

</bundles_post_ra>
